<compile_context>
chip_gen: v6e
topology: v6e:2x2x1
jax: 0.10.0
libtpu: 0.0.40
codegen_flags: <defaults>
</compile_context>

<pallas_src>
import math

import jax
import jax.numpy as jnp
from jax.experimental import pallas as pl
from jax.experimental.pallas import tpu as pltpu


def _cdiv(a, b):
    return -(-a // b)


def _round_up(x, m):
    return _cdiv(x, m) * m


def csdi_kernel(x_ref, w1_ref, b1_ref, w2_ref, b2_ref, emb_ref,
                w3_ref, b3_ref, w4_ref, b4_ref, o_ref):
    # x_ref block: (tile_m, F) f32 row tile.  Cast to the MXU compute dtype
    # here (saves a full host-side HBM read+write of x).
    x = x_ref[...].astype(w1_ref.dtype)

    # encoder: Linear(F, 64) + ReLU    (bf16 MXU, f32 accumulate / elementwise)
    h = jnp.dot(x, w1_ref[...], preferred_element_type=jnp.float32)
    h = jnp.maximum(h + b1_ref[...], 0.0)

    # encoder: Linear(64, 32) + ReLU
    h = jnp.dot(h.astype(w2_ref.dtype), w2_ref[...],
                preferred_element_type=jnp.float32)
    h = jnp.maximum(h + b2_ref[...], 0.0)

    # + time embedding + positional embedding (VMEM-resident per-tile table)
    h = h + emb_ref[...]

    # decoder: Linear(32, 64) + ReLU
    h = jnp.dot(h.astype(w3_ref.dtype), w3_ref[...],
                preferred_element_type=jnp.float32)
    h = jnp.maximum(h + b3_ref[...], 0.0)

    # decoder: Linear(64, F)  (no activation)
    out = jnp.dot(h.astype(w4_ref.dtype), w4_ref[...],
                  preferred_element_type=jnp.float32)
    o_ref[...] = (out + b4_ref[...]).astype(o_ref.dtype)


def csdi_forward(x, params, *, max_rows_per_tile=2048,
                 compute_dtype=jnp.bfloat16, out_dtype=jnp.float32):
    """x: (B, T, F) float32.  params: dict from init_params.

    Returns (B, T, F) in out_dtype (f32 by default, matching PyTorch; pass
    bf16 to halve the output HBM stream if downstream tolerates it).
    """
    B, T, F = x.shape
    M = B * T
    H = params["time_embed"].shape[-1]

    # --- row-tile selection -------------------------------------------------
    # tile_m must be a multiple of T (so the embedding table repeats cleanly
    # inside a tile) and of 8 (sublane alignment) whenever there is more than
    # one tile.  Cap rows per tile so the double-buffered f32 x/out blocks
    # stay within a few MiB of VMEM; ragged last tile avoids row padding.
    base = (8 * T) // math.gcd(8, T)                     # lcm(8, T)
    vmem_rows = max(base, (2 * 1024 * 1024) // max(4 * F, 1))
    target = max(base, min(max_rows_per_tile, vmem_rows))
    if M <= target or base >= M:
        tile_m, num_tiles = M, 1                         # single full block
    else:
        num_tiles = _cdiv(M, target)
        tile_m = _round_up(_cdiv(M, num_tiles), base)
        if tile_m >= M:
            tile_m, num_tiles = M, 1
        else:
            num_tiles = _cdiv(M, tile_m)

    # --- operands -----------------------------------------------------------
    # x stays f32; reshape is free for a contiguous array.
    x_rows = x.reshape(M, F)

    # Combined (T, H) embedding, tiled once to (tile_m, H) and kept resident
    # in VMEM across every grid step (constant-index BlockSpec below).
    emb = params["time_embed"] + params["pos_embed"][0]          # (T, H) f32
    emb_tile = jnp.tile(emb, (tile_m // T, 1))                   # (tile_m, H)

    # Weights in compute dtype (tiny, VMEM-resident); biases stay f32.
    w1 = params["w1"].astype(compute_dtype)
    w2 = params["w2"].astype(compute_dtype)
    w3 = params["w3"].astype(compute_dtype)
    w4 = params["w4"].astype(compute_dtype)
    b1, b2, b3, b4 = params["b1"], params["b2"], params["b3"], params["b4"]

    row_spec = pl.BlockSpec((tile_m, F), lambda i: (i, 0))
    full = lambda a: pl.BlockSpec(a.shape, lambda i: (0,) * a.ndim)

    flops = 2 * M * (F * 64 + 64 * 32 + 32 * 64 + 64 * F)
    bytes_accessed = (
        M * F * 4                                          # f32 input rows
        + M * F * jnp.dtype(out_dtype).itemsize            # output rows
        + emb_tile.size * 4                                 # embedding table
        + sum(a.size * a.dtype.itemsize
              for a in (w1, b1, w2, b2, w3, b3, w4, b4)))

    out_rows = pl.pallas_call(
        csdi_kernel,
        out_shape=jax.ShapeDtypeStruct((M, F), out_dtype),
        grid=(num_tiles,),
        in_specs=[
            row_spec,                 # x row tile (f32, cast in-kernel)
            full(w1), full(b1),
            full(w2), full(b2),
            full(emb_tile),           # resident (tile_m, H) embedding table
            full(w3), full(b3),
            full(w4), full(b4),
        ],
        out_specs=row_spec,
        compiler_params=pltpu.CompilerParams(
            # Row tiles are independent -> shard across TensorCores (v7x).
            # Per-step VMEM is small (<= ~2 MiB per x/out buffer), so the
            # default scoped VMEM limit is fine on v5e/v6e/v7x.
            dimension_semantics=("parallel",)),
        cost_estimate=pl.CostEstimate(
            flops=flops, transcendentals=0, bytes_accessed=bytes_accessed),
    )(x_rows, w1, b1, w2, b2, emb_tile, w3, b3, w4, b4)

    return out_rows.reshape(B, T, F)


def init_params(key, win_size, feats):
    """Deterministic synthetic parameters matching the module's __init__ shapes.

    PyTorch nn.Linear(in, out) stores weight (out, in); here we store the
    transpose (in, out).  Biases are (1, out) for clean 2D broadcast in-kernel.
    """
    ks = jax.random.split(key, 10)

    def linear(kw, kb, fan_in, fan_out):
        bound = 1.0 / jnp.sqrt(fan_in)
        w = jax.random.uniform(kw, (fan_in, fan_out), jnp.float32, -bound, bound)
        b = jax.random.uniform(kb, (1, fan_out), jnp.float32, -bound, bound)
        return w, b

    w1, b1 = linear(ks[0], ks[1], feats, 64)   # encoder[0]
    w2, b2 = linear(ks[2], ks[3], 64, 32)      # encoder[2]
    w3, b3 = linear(ks[4], ks[5], 32, 64)      # decoder[0]
    w4, b4 = linear(ks[6], ks[7], 64, feats)   # decoder[2]
    time_embed = jax.random.normal(ks[8], (win_size, 32), jnp.float32)  # Embedding
    pos_embed = jnp.zeros((1, win_size, 32), jnp.float32)               # Parameter
    return dict(w1=w1, b1=b1, w2=w2, b2=b2, w3=w3, b3=b3, w4=w4, b4=b4,
                time_embed=time_embed, pos_embed=pos_embed)


def csdi_reference(x, params, *, compute_dtype=jnp.float32):
    """Pure-JAX reference of the PyTorch forward (optionally bf16 matmuls)."""
    def dot(a, w):
        return jnp.dot(a.astype(compute_dtype), w.astype(compute_dtype),
                       preferred_element_type=jnp.float32)
    h = jnp.maximum(dot(x, params["w1"]) + params["b1"], 0.0)
    h = jnp.maximum(dot(h, params["w2"]) + params["b2"], 0.0)
    h = h + params["time_embed"][None] + params["pos_embed"]
    h = jnp.maximum(dot(h, params["w3"]) + params["b3"], 0.0)
    return dot(h, params["w4"]) + params["b4"]


if __name__ == "__main__":
    B, T, F = 2, 8, 16   # batch=2, win_size=8, feats=16
    key = jax.random.PRNGKey(0)
    kx, kp = jax.random.split(key)
    x = jax.random.normal(kx, (B, T, F), jnp.float32)
    params = init_params(kp, win_size=T, feats=F)

    out = jax.block_until_ready(csdi_forward(x, params))

    # Matched reference (same bf16-matmul / f32-accumulate path as the kernel).
    ref_matched = csdi_reference(x, params, compute_dtype=jnp.bfloat16)
    # Full-f32 semantic reference (looser tolerance for the bf16 MXU inputs).
    ref_f32 = csdi_reference(x, params, compute_dtype=jnp.float32)

    assert out.shape == (B, T, F)
    assert out.dtype == jnp.float32
    assert jnp.allclose(out, ref_matched, atol=2e-3, rtol=2e-3), \
        "mismatch vs bf16-matched reference"
    assert jnp.allclose(out, ref_f32, atol=5e-2, rtol=5e-2), \
        "mismatch vs f32 reference"
    print("KERNEL_OK")
</pallas_src>

<mosaic_0001>
module attributes {stable_mosaic.version = 11 : i64} {
  func.func @csdi_kernel(%arg0: i32, %arg1: memref<16x16xf32, #tpu.memory_space<vmem>>, %arg2: memref<16x64xbf16, #tpu.memory_space<vmem>>, %arg3: memref<1x64xf32, #tpu.memory_space<vmem>>, %arg4: memref<64x32xbf16, #tpu.memory_space<vmem>>, %arg5: memref<1x32xf32, #tpu.memory_space<vmem>>, %arg6: memref<16x32xf32, #tpu.memory_space<vmem>>, %arg7: memref<32x64xbf16, #tpu.memory_space<vmem>>, %arg8: memref<1x64xf32, #tpu.memory_space<vmem>>, %arg9: memref<64x16xbf16, #tpu.memory_space<vmem>>, %arg10: memref<1x16xf32, #tpu.memory_space<vmem>>, %arg11: memref<16x16xf32, #tpu.memory_space<vmem>>) attributes {dimension_semantics = [#tpu.dimension_semantics<parallel>], iteration_bounds = array<i64: 1>, scalar_prefetch = 0 : i64, scratch_operands = 0 : i64, tpu.core_type = #tpu.core_type<tc>, window_params = [{transform_indices = @transform_0, window_bounds = array<i64: 16, 16>}, {pipeline_mode = #tpu.pipeline_mode<synchronous>, transform_indices = @transform_1, window_bounds = array<i64: 16, 64>}, {pipeline_mode = #tpu.pipeline_mode<synchronous>, transform_indices = @transform_2, window_bounds = array<i64: 1, 64>}, {pipeline_mode = #tpu.pipeline_mode<synchronous>, transform_indices = @transform_3, window_bounds = array<i64: 64, 32>}, {pipeline_mode = #tpu.pipeline_mode<synchronous>, transform_indices = @transform_4, window_bounds = array<i64: 1, 32>}, {pipeline_mode = #tpu.pipeline_mode<synchronous>, transform_indices = @transform_5, window_bounds = array<i64: 16, 32>}, {pipeline_mode = #tpu.pipeline_mode<synchronous>, transform_indices = @transform_6, window_bounds = array<i64: 32, 64>}, {pipeline_mode = #tpu.pipeline_mode<synchronous>, transform_indices = @transform_7, window_bounds = array<i64: 1, 64>}, {pipeline_mode = #tpu.pipeline_mode<synchronous>, transform_indices = @transform_8, window_bounds = array<i64: 64, 16>}, {pipeline_mode = #tpu.pipeline_mode<synchronous>, transform_indices = @transform_9, window_bounds = array<i64: 1, 16>}, {transform_indices = @transform_10, window_bounds = array<i64: 16, 16>}]} {
    %c0 = arith.constant 0 : index
    %c0_0 = arith.constant 0 : index
    %0 = vector.load %arg1[%c0, %c0_0] : memref<16x16xf32, #tpu.memory_space<vmem>>, vector<16x16xf32>
    %1 = arith.truncf %0 : vector<16x16xf32> to vector<16x16xbf16>
    %c0_1 = arith.constant 0 : index
    %c0_2 = arith.constant 0 : index
    %2 = vector.load %arg2[%c0_1, %c0_2] : memref<16x64xbf16, #tpu.memory_space<vmem>>, vector<16x64xbf16>
    %cst = arith.constant dense<0.000000e+00> : vector<16x64xf32>
    %3 = tpu.matmul %1, %2, %cst {dimension_numbers = #tpu.dot_dimension_numbers<[1], [0], [0], [1], [0, 0, 1, 1], [], []>} : vector<16x16xbf16>, vector<16x64xbf16>, vector<16x64xf32> -> vector<16x64xf32>
    %c0_3 = arith.constant 0 : index
    %c0_4 = arith.constant 0 : index
    %4 = vector.load %arg3[%c0_3, %c0_4] : memref<1x64xf32, #tpu.memory_space<vmem>>, vector<1x64xf32>
    %5 = vector.broadcast %4 : vector<1x64xf32> to vector<16x64xf32>
    %6 = arith.addf %3, %5 : vector<16x64xf32>
    %cst_5 = arith.constant 0.000000e+00 : f32
    %7 = vector.broadcast %cst_5 : f32 to vector<16x64xf32>
    %8 = arith.maximumf %6, %7 : vector<16x64xf32>
    %9 = arith.truncf %8 : vector<16x64xf32> to vector<16x64xbf16>
    %c0_6 = arith.constant 0 : index
    %c0_7 = arith.constant 0 : index
    %10 = vector.load %arg4[%c0_6, %c0_7] : memref<64x32xbf16, #tpu.memory_space<vmem>>, vector<64x32xbf16>
    %cst_8 = arith.constant dense<0.000000e+00> : vector<16x32xf32>
    %11 = tpu.matmul %9, %10, %cst_8 {dimension_numbers = #tpu.dot_dimension_numbers<[1], [0], [0], [1], [0, 0, 1, 1], [], []>} : vector<16x64xbf16>, vector<64x32xbf16>, vector<16x32xf32> -> vector<16x32xf32>
    %c0_9 = arith.constant 0 : index
    %c0_10 = arith.constant 0 : index
    %12 = vector.load %arg5[%c0_9, %c0_10] : memref<1x32xf32, #tpu.memory_space<vmem>>, vector<1x32xf32>
    %13 = vector.broadcast %12 : vector<1x32xf32> to vector<16x32xf32>
    %14 = arith.addf %11, %13 : vector<16x32xf32>
    %cst_11 = arith.constant 0.000000e+00 : f32
    %15 = vector.broadcast %cst_11 : f32 to vector<16x32xf32>
    %16 = arith.maximumf %14, %15 : vector<16x32xf32>
    %c0_12 = arith.constant 0 : index
    %c0_13 = arith.constant 0 : index
    %17 = vector.load %arg6[%c0_12, %c0_13] : memref<16x32xf32, #tpu.memory_space<vmem>>, vector<16x32xf32>
    %18 = arith.addf %16, %17 : vector<16x32xf32>
    %19 = arith.truncf %18 : vector<16x32xf32> to vector<16x32xbf16>
    %c0_14 = arith.constant 0 : index
    %c0_15 = arith.constant 0 : index
    %20 = vector.load %arg7[%c0_14, %c0_15] : memref<32x64xbf16, #tpu.memory_space<vmem>>, vector<32x64xbf16>
    %cst_16 = arith.constant dense<0.000000e+00> : vector<16x64xf32>
    %21 = tpu.matmul %19, %20, %cst_16 {dimension_numbers = #tpu.dot_dimension_numbers<[1], [0], [0], [1], [0, 0, 1, 1], [], []>} : vector<16x32xbf16>, vector<32x64xbf16>, vector<16x64xf32> -> vector<16x64xf32>
    %c0_17 = arith.constant 0 : index
    %c0_18 = arith.constant 0 : index
    %22 = vector.load %arg8[%c0_17, %c0_18] : memref<1x64xf32, #tpu.memory_space<vmem>>, vector<1x64xf32>
    %23 = vector.broadcast %22 : vector<1x64xf32> to vector<16x64xf32>
    %24 = arith.addf %21, %23 : vector<16x64xf32>
    %cst_19 = arith.constant 0.000000e+00 : f32
    %25 = vector.broadcast %cst_19 : f32 to vector<16x64xf32>
    %26 = arith.maximumf %24, %25 : vector<16x64xf32>
    %27 = arith.truncf %26 : vector<16x64xf32> to vector<16x64xbf16>
    %c0_20 = arith.constant 0 : index
    %c0_21 = arith.constant 0 : index
    %28 = vector.load %arg9[%c0_20, %c0_21] : memref<64x16xbf16, #tpu.memory_space<vmem>>, vector<64x16xbf16>
    %cst_22 = arith.constant dense<0.000000e+00> : vector<16x16xf32>
    %29 = tpu.matmul %27, %28, %cst_22 {dimension_numbers = #tpu.dot_dimension_numbers<[1], [0], [0], [1], [0, 0, 1, 1], [], []>} : vector<16x64xbf16>, vector<64x16xbf16>, vector<16x16xf32> -> vector<16x16xf32>
    %c0_23 = arith.constant 0 : index
    %c0_24 = arith.constant 0 : index
    %30 = vector.load %arg10[%c0_23, %c0_24] : memref<1x16xf32, #tpu.memory_space<vmem>>, vector<1x16xf32>
    %31 = vector.broadcast %30 : vector<1x16xf32> to vector<16x16xf32>
    %32 = arith.addf %29, %31 : vector<16x16xf32>
    %c0_25 = arith.constant 0 : index
    %c0_26 = arith.constant 0 : index
    %33 = vector.load %arg11[%c0_25, %c0_26] : memref<16x16xf32, #tpu.memory_space<vmem>>, vector<16x16xf32>
    tpu.vector_store %arg11[%c0_25, %c0_26], %32 {strides = array<i32>} : memref<16x16xf32, #tpu.memory_space<vmem>>, vector<16x16xf32>,
    return
  }
  func.func @transform_0(%arg0: i32) -> (i32, i32) {
    %c0_i32 = arith.constant 0 : i32
    %c0_i32_0 = arith.constant 0 : i32
    return %arg0, %c0_i32 : i32, i32
  }
  func.func @transform_1(%arg0: i32) -> (i32, i32) {
    %c0_i32 = arith.constant 0 : i32
    %c0_i32_0 = arith.constant 0 : i32
    %c0_i32_1 = arith.constant 0 : i32
    return %c0_i32, %c0_i32_0 : i32, i32
  }
  func.func @transform_2(%arg0: i32) -> (i32, i32) {
    %c0_i32 = arith.constant 0 : i32
    %c0_i32_0 = arith.constant 0 : i32
    %c0_i32_1 = arith.constant 0 : i32
    return %c0_i32, %c0_i32_0 : i32, i32
  }
  func.func @transform_3(%arg0: i32) -> (i32, i32) {
    %c0_i32 = arith.constant 0 : i32
    %c0_i32_0 = arith.constant 0 : i32
    %c0_i32_1 = arith.constant 0 : i32
    return %c0_i32, %c0_i32_0 : i32, i32
  }
  func.func @transform_4(%arg0: i32) -> (i32, i32) {
    %c0_i32 = arith.constant 0 : i32
    %c0_i32_0 = arith.constant 0 : i32
    %c0_i32_1 = arith.constant 0 : i32
    return %c0_i32, %c0_i32_0 : i32, i32
  }
  func.func @transform_5(%arg0: i32) -> (i32, i32) {
    %c0_i32 = arith.constant 0 : i32
    %c0_i32_0 = arith.constant 0 : i32
    %c0_i32_1 = arith.constant 0 : i32
    return %c0_i32, %c0_i32_0 : i32, i32
  }
  func.func @transform_6(%arg0: i32) -> (i32, i32) {
    %c0_i32 = arith.constant 0 : i32
    %c0_i32_0 = arith.constant 0 : i32
    %c0_i32_1 = arith.constant 0 : i32
    return %c0_i32, %c0_i32_0 : i32, i32
  }
  func.func @transform_7(%arg0: i32) -> (i32, i32) {
    %c0_i32 = arith.constant 0 : i32
    %c0_i32_0 = arith.constant 0 : i32
    %c0_i32_1 = arith.constant 0 : i32
    return %c0_i32, %c0_i32_0 : i32, i32
  }
  func.func @transform_8(%arg0: i32) -> (i32, i32) {
    %c0_i32 = arith.constant 0 : i32
    %c0_i32_0 = arith.constant 0 : i32
    %c0_i32_1 = arith.constant 0 : i32
    return %c0_i32, %c0_i32_0 : i32, i32
  }
  func.func @transform_9(%arg0: i32) -> (i32, i32) {
    %c0_i32 = arith.constant 0 : i32
    %c0_i32_0 = arith.constant 0 : i32
    %c0_i32_1 = arith.constant 0 : i32
    return %c0_i32, %c0_i32_0 : i32, i32
  }
  func.func @transform_10(%arg0: i32) -> (i32, i32) {
    %c0_i32 = arith.constant 0 : i32
    %c0_i32_0 = arith.constant 0 : i32
    return %arg0, %c0_i32 : i32, i32
  }
}

</mosaic_0001>

<bundles_post_ra>
// kernel: tpu_custom_call.1
= control target key start
LH: loop header
LB: loop body
LE: loop exit
PB: predicated region body
PF: predicated region fallthrough
CT: control target
= control target key end

     0   :  { %v476_v1 = vmov 0.0   ;;  %vm477_vm0 = vmmov 0   ;;  %vm55_vm1 = vcmask 130048   ;;  %s620_s0 = inlined_call_operand.vmem [shape: f32[16,16], index: 0, kind: input, shape index: {}]   ;;  %s621_s1 = inlined_call_operand.vmem [shape: bf16[16,64], index: 1, kind: input, shape index: {}]   ;;  %s622_s2 = inlined_call_operand.vmem [shape: f32[1,64], index: 2, kind: input, shape index: {}]   ;;  %s623_s3 = inlined_call_operand.vmem [shape: bf16[64,32], index: 3, kind: input, shape index: {}]   ;;  %s624_s4 = inlined_call_operand.vmem [shape: f32[1,32], index: 4, kind: input, shape index: {}]   ;;  %s625_s5 = inlined_call_operand.vmem [shape: f32[16,32], index: 5, kind: input, shape index: {}]   ;;  %s626_s6 = inlined_call_operand.vmem [shape: bf16[32,64], index: 6, kind: input, shape index: {}]   ;;  %s627_s7 = inlined_call_operand.vmem [shape: f32[1,64], index: 7, kind: input, shape index: {}]   ;;  %s628_s8 = inlined_call_operand.vmem [shape: bf16[64,16], index: 8, kind: input, shape index: {}]   ;;  %s629_s9 = inlined_call_operand.vmem [shape: f32[1,16], index: 9, kind: input, shape index: {}]   ;;  %s630_s10 = inlined_call_operand.hbm [shape: f32[16,16], index: 10, kind: output, shape index: {}]  }
   0x1   :  { %v443_v0 = vld [vmem:[%s621_s1] sm:$0xff]   ;;  %400 = vmatprep.subr.bf16.mxu1 %v476_v1  ;;  %v38_v3 = vld [vmem:[%s620_s0 + $0x8] sm:$0xff]  ;;  %418 = vmatprep.subr.bf16.mxu0 %v476_v1  ;;  %v444_v5 = vld [vmem:[%s623_s3 + $0x18] sm:$0xff]  }
   0x2   :  { %v37_v2 = vld [vmem:[%s620_s0] sm:$0xff]  ;;  %401 = vmatpush3.bf16.msra.mxu1 %v443_v0  ;;  %402 = vmatprep.mubr.msk.bf16.mxu1 %vm477_vm0, %v476_v1 }
   0x3   :  { %v39_v4 = vpack.c.bf16 %v38_v3, %v37_v2  ;;  %406 = vmatprep.subr.bf16.mxu1 %v476_v1  ;;  %422 = vmatprep.mubr.msk.bf16.mxu0 %vm477_vm0, %v476_v1 }
   0x5   :  { %403 = vmatmul.mubr.msk.bf16.vlgmr.msra.gmra.mxu1 %vm55_vm1, %v39_v4 }
   0x6   :  { %407 = vmatpush3.bf16.msra.mxu1 %v444_v5  ;;  %414 = vmatprep.mubr.msk.bf16.mxu1 %vm477_vm0, %v476_v1 }
   0x7   :  { %408 = vmatprep.subr.bf16.mxu1 %v476_v1 }
   0x8   :  { %15 = vsyncpa [#allocation3], 0  ;;  %v445_v6 = vld [vmem:[%s623_s3 + $0x10] sm:$0xff]   ;;  %v446_v7 = vld [vmem:[%s623_s3 + $0x8] sm:$0xff]   ;;  %vm142_vm2 = vcmask 523264   ;;  %vm217_vm3 = vcmask 261120  }
   0x9   :  { %v447_v8 = vld [vmem:[%s623_s3] sm:$0xff]   ;;  %v448_v19 = vld [vmem:[%s626_s6 + $0x8] sm:$0xff]   ;;  %v450_v34 = vld [vmem:[%s628_s8 + $0x18] sm:$0xff]  }
   0xa   :  { %409 = vmatpush3.bf16.msra.mxu1 %v445_v6  ;;  %v366_v9 = vld [vmem:[%s622_s2] ss:$0 sm:$0xff]  ;;  %419 = vmatpush3.bf16.msra.mxu0 %v448_v19  ;;  %v190_v29 = vld [vmem:[%s625_s5 + $0x8] sm:$0xff]  ;;  %v451_v36 = vld [vmem:[%s628_s8 + $0x10] sm:$0xff]  }
   0xb   :  { %410 = vmatprep.subr.bf16.mxu1 %v476_v1  ;;  %420 = vmatprep.subr.bf16.mxu0 %v476_v1  ;;  %v449_v20 = vld [vmem:[%s626_s6] sm:$0xff]   ;;  %v452_v37 = vld [vmem:[%s628_s8 + $0x8] sm:$0xff]  }
   0xc   :  { %v369_v21 = vld [vmem:[%s624_s4] ss:$0 sm:$0xff] }
   0xd   :  { %v189_v28 = vld [vmem:[%s625_s5] sm:$0xff] }
   0xe   :  { %411 = vmatpush3.bf16.msra.mxu1 %v446_v7  ;;  %421 = vmatpush3.bf16.msra.mxu0 %v449_v20  ;;  %v453_v38 = vld [vmem:[%s628_s8] sm:$0xff]   ;;  %s478_s8 = smov [#allocation2]  }
   0xf   :  { %412 = vmatprep.subr.bf16.mxu1 %v476_v1  ;;  %426 = vmatprep.subr.bf16.mxu0 %v476_v1  ;;  %v375_v39 = vld [vmem:[%s627_s7] ss:$0 sm:$0xff]  ;;  %s355_s22 = sshll.u32 %s478_s8, 4  ;;  %s356_s22 = int_to_ptr.vmem [resolvable:$true] %s355_s22 }
  0x10   :  { %v379_v49 = vld [vmem:[%s629_s9] ss:$0 sm:$0xff]  ;;  %s454_s7 = scalar_lea.vmem %s356_s22, 256  ;;  %p459_p1 = scmp.lt.s32.totalorder %s356_s22, %s356_s22 }
  0x11   :  { %p455_p0 = scmp.ne.s32.totalorder %s356_s22, %s454_s7  ;;  %p460_p2 = scmp.lt.s32.totalorder %s454_s7, %s454_s7 }
  0x12   :  { %413 = vmatpush3.bf16.msra.mxu1 %v447_v8 }
  0x13   :  { %p461_p3 = por %p460_p2, %p459_p1 }
  0x15   :  { %p462_p4 = pnand %p461_p3, %p455_p0 }
  0xc5   :  { %v93_v10 = vpop.f32.mrf.mxu1 }
  0xc6   :  { %v94_v12 = vadd.f32 %v366_v9, %v93_v10 }
  0xc7   :  { %v404_v11 = vpop.f32.mrf.mxu1 }
  0xc8   :  { %v100_v16 = vmax.f32 %v94_v12, 0.0 }
  0xc9   :  { %v96_v13 = vpop.f32.mrf.mxu1 }
  0xca   :  { %v97_v14 = vadd.f32 %v366_v9, %v96_v13 }
  0xcb   :  { %v405_v15 = vpop.f32.mrf.mxu1 }
  0xcc   :  { %v101_v17 = vmax.f32 %v97_v14, 0.0 }
  0xce   :  { %v102_v18 = vpack.c.bf16 %v101_v17, %v100_v16 }
  0xd0   :  { %415 = vmatmul.mubr.msk.bf16.vlgmr.msra.gmra.mxu1 %vm142_vm2, %v102_v18 }
 0x190   :  { %v180_v22 = vpop.f32.mrf.mxu1 }
 0x191   :  { %v181_v23 = vadd.f32 %v369_v21, %v180_v22 }
 0x192   :  { %v416_v24 = vpop.f32.mrf.mxu1 }
 0x193   :  { %v187_v26 = vmax.f32 %v181_v23, 0.0 }
 0x194   :  { %v183_v25 = vpop.f32.mrf.mxu1 }
 0x195   :  { %v184_v27 = vadd.f32 %v369_v21, %v183_v25  ;;  %v191_v32 = vadd.f32 %v189_v28, %v187_v26 }
 0x196   :  { %v417_v30 = vpop.f32.mrf.mxu1 }
 0x197   :  { %v188_v31 = vmax.f32 %v184_v27, 0.0 }
 0x199   :  { %v192_v33 = vadd.f32 %v190_v29, %v188_v31 }
 0x19b   :  { %v193_v35 = vpack.c.bf16 %v192_v33, %v191_v32 }
 0x19d   :  { %423 = vmatmul.mubr.msk.bf16.vlgmr.msra.gmra.mxu0 %vm217_vm3, %v193_v35 }
 0x19e   :  { %427 = vmatpush3.bf16.msra.mxu0 %v450_v34  ;;  %434 = vmatprep.mubr.msk.bf16.mxu0 %vm477_vm0, %v476_v1 }
 0x19f   :  { %428 = vmatprep.subr.bf16.mxu0 %v476_v1 }
 0x1a2   :  { %429 = vmatpush3.bf16.msra.mxu0 %v451_v36 }
 0x1a3   :  { %430 = vmatprep.subr.bf16.mxu0 %v476_v1 }
 0x1a6   :  { %431 = vmatpush3.bf16.msra.mxu0 %v452_v37 }
 0x1a7   :  { %432 = vmatprep.subr.bf16.mxu0 %v476_v1 }
 0x1aa   :  { %433 = vmatpush3.bf16.msra.mxu0 %v453_v38 }
 0x25d   :  { %v255_v40 = vpop.f32.mrf.mxu0 }
 0x25e   :  { %v256_v42 = vadd.f32 %v375_v39, %v255_v40 }
 0x25f   :  { %v424_v41 = vpop.f32.mrf.mxu0 }
 0x260   :  { %v262_v46 = vmax.f32 %v256_v42, 0.0 }
 0x261   :  { %v258_v43 = vpop.f32.mrf.mxu0 }
 0x262   :  { %v259_v44 = vadd.f32 %v375_v39, %v258_v43 }
 0x263   :  { %v425_v45 = vpop.f32.mrf.mxu0 }
 0x264   :  { %v263_v47 = vmax.f32 %v259_v44, 0.0 }
 0x266   :  { %v264_v48 = vpack.c.bf16 %v263_v47, %v262_v46 }
 0x268   :  { %435 = vmatmul.mubr.msk.bf16.vlgmr.msra.gmra.mxu0 %vm142_vm2, %v264_v48 }
 0x328   :  { %v341_v50 = vpop.f32.mrf.mxu0 }
 0x329   :  { %v342_v51 = vadd.f32 %v379_v49, %v341_v50 }
 0x32a   :  { %v436_v52 = vpop.f32.mrf.mxu0 }
 0x32b   :  { %348 = vst.msk [vmem:[#allocation2] sm:$0xff] %vm55_vm1, %v342_v51 }
 0x32c   :  { %v344_v53 = vpop.f32.mrf.mxu0 }
 0x32d   :  { %v345_v54 = vadd.f32 %v379_v49, %v344_v53 }
 0x32e   :  { %v437_v55 = vpop.f32.mrf.mxu0 }
 0x32f   :  { %349 = vst.msk [vmem:[#allocation2 + $0x8] sm:$0xff] %vm55_vm1, %v345_v54 }
 0x330   :  { %465 = shalt.err (!%p462_p4)
}
 0x331   :  { %s479_s9 = smov 128   ;;  %s480_s23 = smov 8  }
 0x332   :  { %361 = dma.vmem_to_hbm [thread:$0]  %s356_s22, 256, %s630_s10, [#allocation3], %s479_s9, %s479_s9, %s480_s23  }
 0x333   :  { %474 = dma.done.wait [#allocation3], 256  }
 0x334   :  { %475 = vsyncadd [#allocation3], 4294967040 }
 0x335   :  { %365 = vsyncpa [#allocation3], 1 }

</bundles_post_ra>
